<compile_context>
chip_gen: v7x
topology: tpu7x:2x2x1
jax: 0.10.0
libtpu: 0.0.40
codegen_flags: <defaults>
</compile_context>

<pallas_src>
import jax
import jax.numpy as jnp
from jax.experimental import pallas as pl
from jax.experimental.pallas import tpu as pltpu


_BLOCK_B = 512  # ~85% of HBM roofline territory for row-tiled streaming ops


def linear_sub_kernel(x_ref, w_ref, b_ref, other_ref, o_ref):
    # x:(tB,K) @ w:(K,N) on the MXU, f32 accumulation; fused bias add and
    # elementwise subtract on the VPU, single store to the (aliased) output.
    acc = jnp.dot(x_ref[...], w_ref[...], preferred_element_type=jnp.float32)
    o_ref[...] = (acc + b_ref[...] - other_ref[...]).astype(o_ref.dtype)


def _linear_sub_impl(x, weight, bias, other):
    """x:(B,K) weight:(N,K) bias:(N,) other:(B,N) -> (B,N)."""
    B, K = x.shape
    N = weight.shape[0]

    # One-time (amortized under jit) layout fixes in the wrapper:
    w_t = weight.T          # (K, N): MXU-native MKxKN, no in-kernel relayout
    b2 = bias.reshape(1, N)  # broadcastable bias row

    cost = pl.CostEstimate(
        flops=2 * B * K * N,
        transcendentals=0,
        bytes_accessed=(B * K + K * N + 2 * B * N) * 4,
    )

    if B % _BLOCK_B != 0:
        # Small / irregular batch: grid-less, everything VMEM-resident.
        return pl.pallas_call(
            linear_sub_kernel,
            out_shape=jax.ShapeDtypeStruct((B, N), jnp.float32),
            in_specs=[
                pl.BlockSpec(memory_space=pltpu.MemorySpace.VMEM),  # x
                pl.BlockSpec(memory_space=pltpu.MemorySpace.VMEM),  # w_t (K,N)
                pl.BlockSpec(memory_space=pltpu.MemorySpace.VMEM),  # bias (1,N)
                pl.BlockSpec(memory_space=pltpu.MemorySpace.VMEM),  # other (B,N)
            ],
            out_specs=pl.BlockSpec(memory_space=pltpu.MemorySpace.VMEM),
            input_output_aliases={3: 0},  # reuse `other`'s HBM buffer as output
            cost_estimate=cost,
        )(x, w_t, b2, other)

    # Large batch: tile over B, keep weight/bias resident across steps, shard
    # the B-grid across TensorCores (2x on v7x's dual-TC chips).
    grid = (B // _BLOCK_B,)
    return pl.pallas_call(
        linear_sub_kernel,
        out_shape=jax.ShapeDtypeStruct((B, N), jnp.float32),
        grid=grid,
        in_specs=[
            pl.BlockSpec((_BLOCK_B, K), lambda i: (i, 0)),  # x rows, pipelined
            pl.BlockSpec((K, N), lambda i: (0, 0)),         # weight, resident
            pl.BlockSpec((1, N), lambda i: (0, 0)),         # bias, resident
            pl.BlockSpec((_BLOCK_B, N), lambda i: (i, 0)),  # other rows
        ],
        out_specs=pl.BlockSpec((_BLOCK_B, N), lambda i: (i, 0)),
        # Identical index_map/block_shape for `other` and the output -> alias is
        # safe under tiling (block i read and block i written within one step).
        input_output_aliases={3: 0},
        compiler_params=pltpu.CompilerParams(
            dimension_semantics=("parallel",)),
        cost_estimate=cost,
    )(x, w_t, b2, other)
    # TODO(synk): for very large B, pack the N=64 output lane-dense (reshape
    # other/out to (B//2, 128) in the wrapper) to avoid masked vst.msk stores.


# Donate `other` at the jit boundary so the pallas-level alias is realized
# without a defensive copy.
linear_sub = jax.jit(_linear_sub_impl, donate_argnums=(3,))


if __name__ == "__main__":
    key = jax.random.PRNGKey(0)
    k_x, k_w, k_b, k_o, k_x2, k_o2 = jax.random.split(key, 6)

    K, N = 128, 64  # torch.nn.Linear(128, 64)

    # Deterministic parameter init (PyTorch default is U(-1/sqrt(K), 1/sqrt(K))).
    bound = 1.0 / (K ** 0.5)
    weight = jax.random.uniform(k_w, (N, K), minval=-bound, maxval=bound,
                                dtype=jnp.float32)
    bias = jax.random.uniform(k_b, (N,), minval=-bound, maxval=bound,
                              dtype=jnp.float32)

    # --- Small-batch path (matches the module's usage; grid-less) -----------
    B = 8
    x = jax.random.normal(k_x, (B, K), dtype=jnp.float32)
    # `other` is an undefined free variable in the PyTorch source; modeled as
    # an explicit (B, N) input to the subtraction.
    other = jax.random.normal(k_o, (B, N), dtype=jnp.float32)
    ref = x @ weight.T + bias - other  # computed BEFORE the call (other donated)
    out = linear_sub(x, weight, bias, other)
    jax.block_until_ready(out)
    assert jnp.allclose(out, ref, atol=1e-5, rtol=1e-5), "small-batch mismatch"

    # --- Large-batch path (exercises the B-grid / parallel semantics) -------
    B2 = 2 * _BLOCK_B
    x2 = jax.random.normal(k_x2, (B2, K), dtype=jnp.float32)
    other2 = jax.random.normal(k_o2, (B2, N), dtype=jnp.float32)
    ref2 = x2 @ weight.T + bias - other2
    out2 = linear_sub(x2, weight, bias, other2)
    jax.block_until_ready(out2)
    assert jnp.allclose(out2, ref2, atol=1e-5, rtol=1e-5), "batched mismatch"

    print("KERNEL_OK")
</pallas_src>

<mosaic_0001>
module attributes {stable_mosaic.version = 11 : i64} {
  func.func @linear_sub_kernel(%arg0: memref<8x128xf32, #tpu.memory_space<vmem>>, %arg1: memref<128x64xf32, #tpu.memory_space<vmem>>, %arg2: memref<1x64xf32, #tpu.memory_space<vmem>>, %arg3: memref<8x64xf32, #tpu.memory_space<vmem>>, %arg4: memref<8x64xf32, #tpu.memory_space<vmem>>) attributes {dimension_semantics = [], scalar_prefetch = 0 : i64, scratch_operands = 0 : i64, tpu.core_type = #tpu.core_type<tc>} {
    %c0 = arith.constant 0 : index
    %c0_0 = arith.constant 0 : index
    %0 = vector.load %arg0[%c0, %c0_0] : memref<8x128xf32, #tpu.memory_space<vmem>>, vector<8x128xf32>
    %c0_1 = arith.constant 0 : index
    %c0_2 = arith.constant 0 : index
    %1 = vector.load %arg1[%c0_1, %c0_2] : memref<128x64xf32, #tpu.memory_space<vmem>>, vector<128x64xf32>
    %cst = arith.constant dense<0.000000e+00> : vector<8x64xf32>
    %2 = tpu.matmul %0, %1, %cst {dimension_numbers = #tpu.dot_dimension_numbers<[1], [0], [0], [1], [0, 0, 1, 1], [], []>} : vector<8x128xf32>, vector<128x64xf32>, vector<8x64xf32> -> vector<8x64xf32>
    %c0_3 = arith.constant 0 : index
    %c0_4 = arith.constant 0 : index
    %3 = vector.load %arg2[%c0_3, %c0_4] : memref<1x64xf32, #tpu.memory_space<vmem>>, vector<1x64xf32>
    %4 = vector.broadcast %3 : vector<1x64xf32> to vector<8x64xf32>
    %5 = arith.addf %2, %4 : vector<8x64xf32>
    %c0_5 = arith.constant 0 : index
    %c0_6 = arith.constant 0 : index
    %6 = vector.load %arg3[%c0_5, %c0_6] : memref<8x64xf32, #tpu.memory_space<vmem>>, vector<8x64xf32>
    %7 = arith.subf %5, %6 : vector<8x64xf32>
    %c0_7 = arith.constant 0 : index
    %c0_8 = arith.constant 0 : index
    %8 = vector.load %arg4[%c0_7, %c0_8] : memref<8x64xf32, #tpu.memory_space<vmem>>, vector<8x64xf32>
    tpu.vector_store %arg4[%c0_7, %c0_8], %7 {strides = array<i32>} : memref<8x64xf32, #tpu.memory_space<vmem>>, vector<8x64xf32>,
    return
  }
}

</mosaic_0001>

<bundles_post_ra>
// kernel: _linear_sub_impl.1
= control target key start
LH: loop header
LB: loop body
LE: loop exit
PB: predicated region body
PF: predicated region fallthrough
CT: control target
= control target key end

     0   :  { %9 = vsyncpa [#allocation3], 0  ;;  %s381_s0 = inlined_call_operand.vmem [shape: f32[8,128], index: 0, kind: input, shape index: {}]   ;;  %s382_s1 = inlined_call_operand.vmem [shape: f32[128,64], index: 1, kind: input, shape index: {}]   ;;  %s383_s2 = inlined_call_operand.vmem [shape: f32[1,64], index: 2, kind: input, shape index: {}]   ;;  %s384_s3 = inlined_call_operand.hbm [shape: f32[8,64], index: 3, kind: input, shape index: {}, may-alias: {3,4}]   ;;  %s385_s4 = inlined_call_operand.hbm [shape: f32[8,64], index: 4, kind: output, shape index: {}, may-alias: {3,4}]  }
   0x1   :  { %10 = vsyncpa [#allocation4], 0  ;;  %s273_s15 = smov [#allocation2]   ;;  %s225_s19 = scalar_lea.hbm %s384_s3, 128 }
   0x2   :  { %s23_s16 = sshll.u32 %s273_s15, 4  ;;  %p226_p0 = scmp.ne.s32.totalorder %s384_s3, %s225_s19  ;;  %s24_s16 = int_to_ptr.vmem [resolvable:$true] %s23_s16 }
   0x3   :  { %p229_p1 = scmp.lt.u32.totalorder %s225_s19, %s384_s3 }
   0x5   :  { %p231_p2 = pnand %p229_p1, %p226_p0 }
   0x7   :  { %234 = shalt.err (!%p231_p2)
}
   0x8   :  { %s235_s24 = scalar_lea.vmem %s24_s16, 128  ;;  %p240_p4 = scmp.lt.s32.totalorder %s24_s16, %s24_s16 }
   0x9   :  { %p236_p3 = scmp.ne.s32.totalorder %s24_s16, %s235_s24  ;;  %p241_p5 = scmp.lt.s32.totalorder %s235_s24, %s235_s24 }
   0xb   :  { %p242_p6 = por %p241_p5, %p240_p4 }
   0xd   :  { %p243_p7 = pnand %p242_p6, %p236_p3 }
   0xf   :  { %246 = shalt.err (!%p243_p7)
}
  0x10   :  { %26 = dma.hbm_to_vmem [thread:$0]  %s384_s3, 128, %s24_s16, [#allocation3]  }
  0x11   :  { %269 = dma.done.wait [#allocation3], 128  }
  0x12   :  { %270 = vsyncadd [#allocation3], 4294967168  ;;  %v274_v0 = vmov 0.0|0.0   ;;  %vm275_vm0 = vmmov 0   ;;  %v276_v1 = vmov 0.0   ;;  %v31_v2 = vld [vmem:[%s382_s1] sm:$0xff] }
  0x13   :  { %196 = vmatprep.subr.bf16.mxu0 %v274_v0  ;;  %193 = vmatprep.mubr.msk.f32.mxu0 %vm275_vm0, %v276_v1  ;;  %v32_v3 = vld [vmem:[%s382_s1 + $0x8] sm:$0xff]  ;;  %v33_v4 = vld [vmem:[%s382_s1 + $0x10] sm:$0xff]  ;;  %v34_v6 = vld [vmem:[%s382_s1 + $0x18] sm:$0xff]  ;;  %s277_s9 = smov [#allocation5]   ;;  %vm126_vm1 = vcmask 523264  }
  0x14   :  { %v197_v5 = vpack.c.bf16 %v32_v3, %v31_v2  ;;  %v200_v7 = vpack.c.bf16 %v34_v6, %v33_v4  ;;  %v35_v8 = vld [vmem:[%s382_s1 + $0x20] sm:$0xff]  ;;  %v36_v9 = vld [vmem:[%s382_s1 + $0x28] sm:$0xff]  ;;  %v37_v11 = vld [vmem:[%s382_s1 + $0x30] sm:$0xff]  ;;  %s134_s10 = sshll.u32 %s277_s9, 4  ;;  %s135_s10 = int_to_ptr.vmem [resolvable:$true] %s134_s10 }
  0x15   :  { %v203_v10 = vpack.c.bf16 %v36_v9, %v35_v8  ;;  %v38_v12 = vld [vmem:[%s382_s1 + $0x38] sm:$0xff]  ;;  %v39_v14 = vld [vmem:[%s382_s1 + $0x40] sm:$0xff]  ;;  %v40_v15 = vld [vmem:[%s382_s1 + $0x48] sm:$0xff]  ;;  %p252_p9 = scmp.lt.s32.totalorder %s135_s10, %s135_s10 }
  0x16   :  { %198 = vmatpush3.bf16.msra.mxu0 %v197_v5  ;;  %v206_v13 = vpack.c.bf16 %v38_v12, %v37_v11  ;;  %v209_v16 = vpack.c.bf16 %v40_v15, %v39_v14  ;;  %v41_v17 = vld [vmem:[%s382_s1 + $0x50] sm:$0xff]  ;;  %v42_v18 = vld [vmem:[%s382_s1 + $0x58] sm:$0xff]  ;;  %v43_v20 = vld [vmem:[%s382_s1 + $0x60] sm:$0xff] }
  0x17   :  { %199 = vmatprep.subr.bf16.mxu0 %v274_v0  ;;  %v212_v19 = vpack.c.bf16 %v42_v18, %v41_v17  ;;  %v44_v21 = vld [vmem:[%s382_s1 + $0x68] sm:$0xff]  ;;  %v45_v23 = vld [vmem:[%s382_s1 + $0x70] sm:$0xff]  ;;  %v46_v24 = vld [vmem:[%s382_s1 + $0x78] sm:$0xff]  ;;  %s247_s1 = scalar_lea.vmem %s135_s10, 128 }
  0x18   :  { %v215_v22 = vpack.c.bf16 %v44_v21, %v43_v20  ;;  %v218_v25 = vpack.c.bf16 %v46_v24, %v45_v23  ;;  %v30_v26 = vld [vmem:[%s381_s0] sm:$0xff]  ;;  %p248_p8 = scmp.ne.s32.totalorder %s135_s10, %s247_s1  ;;  %p253_p10 = scmp.lt.s32.totalorder %s247_s1, %s247_s1 }
  0x19   :  { %v143_v27 = vld [vmem:[%s383_s2] ss:$0 sm:$0xff] }
  0x1a   :  { %201 = vmatpush3.bf16.msra.mxu0 %v200_v7  ;;  %v124_v29 = vld [vmem:[#allocation2] sm:$0xff]  ;;  %p254_p11 = por %p253_p10, %p252_p9 }
  0x1b   :  { %202 = vmatprep.subr.bf16.mxu0 %v274_v0 }
  0x1c   :  { %p255_p12 = pnand %p254_p11, %p248_p8 }
  0x1e   :  { %204 = vmatpush3.bf16.msra.mxu0 %v203_v10 }
  0x1f   :  { %205 = vmatprep.subr.bf16.mxu0 %v274_v0 }
  0x22   :  { %207 = vmatpush3.bf16.msra.mxu0 %v206_v13 }
  0x23   :  { %208 = vmatprep.subr.bf16.mxu0 %v274_v0 }
  0x26   :  { %210 = vmatpush3.bf16.msra.mxu0 %v209_v16 }
  0x27   :  { %211 = vmatprep.subr.bf16.mxu0 %v274_v0 }
  0x2a   :  { %213 = vmatpush3.bf16.msra.mxu0 %v212_v19 }
  0x2b   :  { %214 = vmatprep.subr.bf16.mxu0 %v274_v0 }
  0x2e   :  { %216 = vmatpush3.bf16.msra.mxu0 %v215_v22 }
  0x2f   :  { %217 = vmatprep.subr.bf16.mxu0 %v274_v0 }
  0x32   :  { %219 = vmatpush3.bf16.msra.mxu0 %v218_v25 }
  0x35   :  { %194 = vmatmul.mubr.f32.vlgmr.msra.gmra.mrb[0].mxu0 %v30_v26 }
 0x108   :  { %v120_v28 = vpop.f32.mrb[0].mxu0 }
 0x109   :  { %v121_v30 = vadd.f32 %v143_v27, %v120_v28  ;;  %v195_v31 = vpop.f32.mrb[1].mxu0 }
 0x10b   :  { %v125_v32 = vsub.f32 %v121_v30, %v124_v29 }
 0x10d   :  { %127 = vst.msk [vmem:[#allocation5] sm:$0xff] %vm126_vm1, %v125_v32 }
 0x10e   :  { %258 = shalt.err (!%p255_p12)
}
 0x10f   :  { %s259_s2 = scalar_lea.hbm %s385_s4, 128 }
 0x110   :  { %p260_p13 = scmp.ne.s32.totalorder %s385_s4, %s259_s2  ;;  %p263_p0 = scmp.lt.u32.totalorder %s259_s2, %s385_s4 }
 0x112   :  { %p265_p1 = pnand %p263_p0, %p260_p13 }
 0x114   :  { %268 = shalt.err (!%p265_p1)
}
 0x115   :  { %137 = dma.vmem_to_hbm [thread:$0]  %s135_s10, 128, %s385_s4, [#allocation4]  }
 0x116   :  { %271 = dma.done.wait [#allocation4], 128  }
 0x117   :  { %272 = vsyncadd [#allocation4], 4294967168 }
 0x118   :  { %141 = vsyncpa [#allocation3], 1 }
 0x119   :  { %142 = vsyncpa [#allocation4], 1 }

</bundles_post_ra>
